<compile_context>
chip_gen: v5e
topology: v5e:2x2
jax: 0.10.0
libtpu: 0.0.40
codegen_flags: <defaults>
</compile_context>

<pallas_src>
import jax
import jax.numpy as jnp
from jax.experimental import pallas as pl
from jax.experimental.pallas import tpu as pltpu


def _round_up(x, m):
    return ((x + m - 1) // m) * m


def _pick_tk(f_p, cap):
    """Largest multiple of 128 <= cap that divides f_p (f_p is a multiple of 128)."""
    tk = max(128, (min(cap, f_p) // 128) * 128)
    while f_p % tk:
        tk -= 128
    return tk


def _tpu_tuning():
    """Per-generation tile / VMEM defaults.

    Conservative defaults assume a v7x-like part (64 MiB VMEM per TensorCore,
    2 TensorCores per chip).  If we positively identify a 128 MiB,
    single-TensorCore part (v4/v5/v6) we raise the cap and tile sizes.
    """
    vmem_cap = 56 * 1024 * 1024
    num_tc = 2
    tm_def, tk_def = 256, 512
    try:
        kind = jax.devices()[0].device_kind.lower()
    except Exception:
        kind = ""
    if any(g in kind for g in ("v4", "v5", "v6")):
        vmem_cap = 100 * 1024 * 1024
        num_tc = 1
        tm_def, tk_def = 512, 1024
    return vmem_cap, num_tc, tm_def, tk_def


def _footprint_bytes(tm, tk, hid_p, proj_p):
    """VMEM footprint estimate (bytes), including the k==last temporaries."""
    stream = 2 * (tm * tk * 2) + 2 * (tk * hid_p * 2)       # x, We: bf16, double-buffered
    resident = (hid_p * hid_p * 2 + hid_p * proj_p * 2      # W1, W2: bf16, single-buffered
                + 2 * hid_p * 4 + proj_p * 4)                # be, b1, b2: f32
    out = 2 * (tm * proj_p * 4)                              # output tile, double-buffered
    acc = tm * hid_p * 4                                     # f32 accumulator scratch
    temps = tm * hid_p * (4 + 2 + 4 + 2) + tm * proj_p * 4   # h/p (f32 + bf16 copies), z
    return stream + resident + out + acc + temps


def _resident_spec(block_shape):
    """BlockSpec for a grid-invariant operand: keep a single VMEM buffer."""
    idx = lambda i, k: (0, 0)
    try:
        return pl.BlockSpec(block_shape, idx, pipeline_mode=pl.Buffered(1))
    except Exception:  # older jax without pipeline_mode support
        return pl.BlockSpec(block_shape, idx)


def _simclr_mlp_kernel(x_ref, we_ref, be_ref, w1_ref, b1_ref, w2_ref, b2_ref,
                       o_ref, h_acc):
    """Fused encoder + projector with a K-tiled encoder reduction.

    h_acc (TM, HIDp) f32 accumulates x @ We across the k grid axis; the
    projector MLP runs exactly once at k == last and writes the output tile.
    """
    k = pl.program_id(1)

    @pl.when(k == 0)
    def _():
        h_acc[...] = jnp.zeros_like(h_acc)

    # Encoder partial matmul: bf16 operands straight off HBM, f32 accumulation.
    h_acc[...] += jnp.dot(x_ref[...], we_ref[...],
                          preferred_element_type=jnp.float32)

    @pl.when(k == pl.num_programs(1) - 1)
    def _():
        # Encoder bias + ReLU on the f32 accumulator (applied exactly once).
        h = jnp.maximum(h_acc[...] + be_ref[...], 0.0)
        # Projector layer 1: Linear + ReLU (bf16 matmul, f32 accumulate).
        p = jnp.dot(h.astype(jnp.bfloat16), w1_ref[...],
                    preferred_element_type=jnp.float32) + b1_ref[...]
        p = jnp.maximum(p, 0.0)
        # Projector layer 2: Linear.
        z = jnp.dot(p.astype(jnp.bfloat16), w2_ref[...],
                    preferred_element_type=jnp.float32) + b2_ref[...]
        o_ref[...] = z.astype(o_ref.dtype)


def prepare_params(we, be, w1, b1, w2, b2):
    """One-time parameter prep: pad to lane-dense (multiple-of-128) shapes and
    cast weights to bf16.  Hoisted out of the per-step forward so its HBM
    traffic is not paid on every call."""
    f, hid = we.shape
    proj = w2.shape[1]
    f_p = _round_up(f, 128)
    hid_p = _round_up(hid, 128)
    proj_p = _round_up(proj, 128)

    wep = jnp.zeros((f_p, hid_p), jnp.bfloat16).at[:f, :hid].set(we.astype(jnp.bfloat16))
    bep = jnp.zeros((1, hid_p), jnp.float32).at[:, :hid].set(be.astype(jnp.float32))
    w1p = jnp.zeros((hid_p, hid_p), jnp.bfloat16).at[:hid, :hid].set(w1.astype(jnp.bfloat16))
    b1p = jnp.zeros((1, hid_p), jnp.float32).at[:, :hid].set(b1.astype(jnp.float32))
    w2p = jnp.zeros((hid_p, proj_p), jnp.bfloat16).at[:hid, :proj].set(w2.astype(jnp.bfloat16))
    b2p = jnp.zeros((1, proj_p), jnp.float32).at[:, :proj].set(b2.astype(jnp.float32))

    arrays = (wep, bep, w1p, b1p, w2p, b2p)
    dims = (f, hid, proj)  # static python ints (pass with static_argnums under jit)
    return arrays, dims


def simclr_mlp(xs, prep_arrays, dims, *, tm=None, tk=None):
    """xs: (N, F) float.  Returns (N, PROJ) f32 = projector(relu(encoder(xs)))."""
    wep, bep, w1p, b1p, w2p, b2p = prep_arrays
    f, hid, proj = dims
    n = xs.shape[0]
    assert xs.shape[1] == f, (xs.shape, f)
    f_p, hid_p = wep.shape
    proj_p = w2p.shape[1]

    vmem_cap, num_tc, tm_def, tk_def = _tpu_tuning()
    tm = tm_def if tm is None else tm
    tk = tk_def if tk is None else tk

    # Row tile: multiple of 8 sublanes, capped at the (8-padded) row count.
    n_p8 = _round_up(n, 8)
    tm = max(8, (min(tm, n_p8) // 8) * 8)
    # Dual-TensorCore parts: ensure the 'parallel' row axis has >= 2 tiles.
    if num_tc >= 2 and n_p8 // tm < 2 and n_p8 >= 16:
        tm = max(8, ((n_p8 // 2) // 8) * 8)

    # K tile over F: multiple of 128 lanes that exactly divides f_p
    # (F itself is only padded up to a multiple of 128, never up to tk).
    tk = _pick_tk(f_p, min(tk, f_p))

    # Shrink tiles until the footprint (with ~25% headroom) fits the VMEM cap.
    while True:
        fp_bytes = _footprint_bytes(tm, tk, hid_p, proj_p)
        if fp_bytes * 5 // 4 <= vmem_cap:
            break
        if tk > 128:
            tk = _pick_tk(f_p, tk // 2)
        elif tm > 8:
            tm = max(8, ((tm // 2) // 8) * 8)
        else:
            break

    n_p = _round_up(n_p8, tm)

    # Pad x (bf16 already) to the tiled shape in a single op.  Zero padding is
    # exact: padded columns hit zero We rows, padded output rows are sliced off.
    xb = xs.astype(jnp.bfloat16)
    if (n_p, f_p) != (n, f):
        xb = jnp.pad(xb, ((0, n_p - n), (0, f_p - f)))

    grid = (n_p // tm, f_p // tk)
    vmem_limit = int(min(max(fp_bytes * 3 // 2, 16 * 1024 * 1024), vmem_cap))

    out_p = pl.pallas_call(
        _simclr_mlp_kernel,
        out_shape=jax.ShapeDtypeStruct((n_p, proj_p), jnp.float32),
        grid=grid,
        in_specs=[
            pl.BlockSpec((tm, tk), lambda i, k: (i, k)),       # x row/K tile (bf16)
            pl.BlockSpec((tk, hid_p), lambda i, k: (k, 0)),    # We, K-streamed (bf16)
            _resident_spec((1, hid_p)),                        # be
            _resident_spec((hid_p, hid_p)),                    # W1 (resident)
            _resident_spec((1, hid_p)),                        # b1
            _resident_spec((hid_p, proj_p)),                   # W2 (resident)
            _resident_spec((1, proj_p)),                       # b2
        ],
        out_specs=pl.BlockSpec((tm, proj_p), lambda i, k: (i, 0)),
        scratch_shapes=[pltpu.VMEM((tm, hid_p), jnp.float32)],  # encoder accumulator
        compiler_params=pltpu.CompilerParams(
            dimension_semantics=("parallel", "arbitrary"),
            vmem_limit_bytes=vmem_limit),
    )(xb, wep, bep, w1p, b1p, w2p, b2p)

    # Padded rows contain relu(be)-derived garbage -- slice them (and padded
    # columns) away before returning.
    return out_p[:n, :proj]


def simclr_forward(x, prep_arrays, dims):
    """Reproduces SimClr.forward (train mode): two augmented views -> encoder
    -> projector -> interleaved rows  z[2i] = z1[i], z[2i+1] = z2[i]."""
    b, c, h, w = x.shape
    # TODO(synk): stochastic torchvision augmentations (RandomResizedCrop,
    # ColorJitter, RandomGrayscale) have no clean Pallas equivalent; a
    # deterministic identity / horizontal-flip pair stands in for the two views.
    xb = x.astype(jnp.bfloat16)          # cast once; all later x traffic is bf16
    x_1 = xb
    x_2 = jnp.flip(xb, axis=-1)          # horizontal flip along W
    # Interleave the views on the input side so the kernel output is already in
    # the module's z-order (no post-kernel interleave / extra HBM round trip).
    xs = jnp.stack([x_1, x_2], axis=1).reshape(2 * b, c * h * w)
    return simclr_mlp(xs, prep_arrays, dims)


def init_params(key, in_features, hidden, proj_dim):
    k = jax.random.split(key, 6)
    scale_e = 1.0 / jnp.sqrt(in_features)
    scale_h = 1.0 / jnp.sqrt(hidden)
    we = jax.random.uniform(k[0], (in_features, hidden), jnp.float32, -scale_e, scale_e)
    be = jax.random.uniform(k[1], (1, hidden), jnp.float32, -scale_e, scale_e)
    w1 = jax.random.uniform(k[2], (hidden, hidden), jnp.float32, -scale_h, scale_h)
    b1 = jax.random.uniform(k[3], (1, hidden), jnp.float32, -scale_h, scale_h)
    w2 = jax.random.uniform(k[4], (hidden, proj_dim), jnp.float32, -scale_h, scale_h)
    b2 = jax.random.uniform(k[5], (1, proj_dim), jnp.float32, -scale_h, scale_h)
    return we, be, w1, b1, w2, b2


if __name__ == "__main__":
    key = jax.random.PRNGKey(0)
    kx, kp = jax.random.split(key)

    B, C, H, W = 2, 4, 16, 16        # small NCHW input
    HID, PROJ = 32, 16               # encoder hidden dim, projector output dim

    x = jax.random.normal(kx, (B, C, H, W), dtype=jnp.float32)
    params = init_params(kp, C * H * W, HID, PROJ)

    # One-time parameter prep (pad + bf16 cast), hoisted out of the forward.
    prep_arrays, dims = prepare_params(*params)

    fwd = jax.jit(simclr_forward, static_argnums=(2,))
    z = fwd(x, prep_arrays, dims)
    jax.block_until_ready(z)

    assert z.shape == (2 * B, PROJ)
    assert z.dtype == jnp.float32
    print("KERNEL_OK")
</pallas_src>

<mosaic_0001>
module attributes {stable_mosaic.version = 11 : i64} {
  func.func @_simclr_mlp_kernel(%arg0: i32, %arg1: i32, %arg2: memref<8x512xbf16, #tpu.memory_space<vmem>>, %arg3: memref<512x128xbf16, #tpu.memory_space<vmem>>, %arg4: memref<1x128xf32, #tpu.memory_space<vmem>>, %arg5: memref<128x128xbf16, #tpu.memory_space<vmem>>, %arg6: memref<1x128xf32, #tpu.memory_space<vmem>>, %arg7: memref<128x128xbf16, #tpu.memory_space<vmem>>, %arg8: memref<1x128xf32, #tpu.memory_space<vmem>>, %arg9: memref<8x128xf32, #tpu.memory_space<vmem>>, %arg10: memref<8x128xf32, #tpu.memory_space<vmem>>) attributes {dimension_semantics = [#tpu.dimension_semantics<parallel>, #tpu.dimension_semantics<arbitrary>], iteration_bounds = array<i64: 1, 2>, scalar_prefetch = 0 : i64, scratch_operands = 1 : i64, tpu.core_type = #tpu.core_type<tc>, window_params = [{transform_indices = @transform_0, window_bounds = array<i64: 8, 512>}, {transform_indices = @transform_1, window_bounds = array<i64: 512, 128>}, {pipeline_mode = #tpu.pipeline_mode<synchronous>, transform_indices = @transform_2, window_bounds = array<i64: 1, 128>}, {pipeline_mode = #tpu.pipeline_mode<synchronous>, transform_indices = @transform_3, window_bounds = array<i64: 128, 128>}, {pipeline_mode = #tpu.pipeline_mode<synchronous>, transform_indices = @transform_4, window_bounds = array<i64: 1, 128>}, {pipeline_mode = #tpu.pipeline_mode<synchronous>, transform_indices = @transform_5, window_bounds = array<i64: 128, 128>}, {pipeline_mode = #tpu.pipeline_mode<synchronous>, transform_indices = @transform_6, window_bounds = array<i64: 1, 128>}, {transform_indices = @transform_7, window_bounds = array<i64: 8, 128>}]} {
    %c0_i32 = arith.constant 0 : i32
    %0 = arith.cmpi eq, %arg1, %c0_i32 : i32
    %1 = arith.extui %0 : i1 to i32
    %c0_i32_0 = arith.constant 0 : i32
    %2 = arith.cmpi ne, %1, %c0_i32_0 : i32
    scf.if %2 {
      %cst_9 = arith.constant 0.000000e+00 : f32
      %12 = vector.broadcast %cst_9 : f32 to vector<8x128xf32>
      %c0_10 = arith.constant 0 : index
      %c0_11 = arith.constant 0 : index
      %13 = vector.load %arg10[%c0_10, %c0_11] : memref<8x128xf32, #tpu.memory_space<vmem>>, vector<8x128xf32>
      tpu.vector_store %arg10[%c0_10, %c0_11], %12 {strides = array<i32>} : memref<8x128xf32, #tpu.memory_space<vmem>>, vector<8x128xf32>,
    } else {
    }
    %c0 = arith.constant 0 : index
    %c0_1 = arith.constant 0 : index
    %3 = vector.load %arg10[%c0, %c0_1] : memref<8x128xf32, #tpu.memory_space<vmem>>, vector<8x128xf32>
    %c0_2 = arith.constant 0 : index
    %c0_3 = arith.constant 0 : index
    %4 = vector.load %arg2[%c0_2, %c0_3] : memref<8x512xbf16, #tpu.memory_space<vmem>>, vector<8x512xbf16>
    %c0_4 = arith.constant 0 : index
    %c0_5 = arith.constant 0 : index
    %5 = vector.load %arg3[%c0_4, %c0_5] : memref<512x128xbf16, #tpu.memory_space<vmem>>, vector<512x128xbf16>
    %cst = arith.constant dense<0.000000e+00> : vector<8x128xf32>
    %6 = tpu.matmul %4, %5, %cst {dimension_numbers = #tpu.dot_dimension_numbers<[1], [0], [0], [1], [0, 0, 1, 1], [], []>} : vector<8x512xbf16>, vector<512x128xbf16>, vector<8x128xf32> -> vector<8x128xf32>
    %7 = arith.addf %3, %6 : vector<8x128xf32>
    %c0_6 = arith.constant 0 : index
    %c0_7 = arith.constant 0 : index
    %8 = vector.load %arg10[%c0_6, %c0_7] : memref<8x128xf32, #tpu.memory_space<vmem>>, vector<8x128xf32>
    tpu.vector_store %arg10[%c0_6, %c0_7], %7 {strides = array<i32>} : memref<8x128xf32, #tpu.memory_space<vmem>>, vector<8x128xf32>,
    %c1_i32 = arith.constant 1 : i32
    %9 = arith.cmpi eq, %arg1, %c1_i32 : i32
    %10 = arith.extui %9 : i1 to i32
    %c0_i32_8 = arith.constant 0 : i32
    %11 = arith.cmpi ne, %10, %c0_i32_8 : i32
    scf.if %11 {
      %c0_9 = arith.constant 0 : index
      %c0_10 = arith.constant 0 : index
      %12 = vector.load %arg10[%c0_9, %c0_10] : memref<8x128xf32, #tpu.memory_space<vmem>>, vector<8x128xf32>
      %c0_11 = arith.constant 0 : index
      %c0_12 = arith.constant 0 : index
      %13 = vector.load %arg4[%c0_11, %c0_12] : memref<1x128xf32, #tpu.memory_space<vmem>>, vector<1x128xf32>
      %14 = vector.broadcast %13 : vector<1x128xf32> to vector<8x128xf32>
      %15 = arith.addf %12, %14 : vector<8x128xf32>
      %cst_13 = arith.constant 0.000000e+00 : f32
      %16 = vector.broadcast %cst_13 : f32 to vector<8x128xf32>
      %17 = arith.maximumf %15, %16 : vector<8x128xf32>
      %18 = arith.truncf %17 : vector<8x128xf32> to vector<8x128xbf16>
      %c0_14 = arith.constant 0 : index
      %c0_15 = arith.constant 0 : index
      %19 = vector.load %arg5[%c0_14, %c0_15] : memref<128x128xbf16, #tpu.memory_space<vmem>>, vector<128x128xbf16>
      %cst_16 = arith.constant dense<0.000000e+00> : vector<8x128xf32>
      %20 = tpu.matmul %18, %19, %cst_16 {dimension_numbers = #tpu.dot_dimension_numbers<[1], [0], [0], [1], [0, 0, 1, 1], [], []>} : vector<8x128xbf16>, vector<128x128xbf16>, vector<8x128xf32> -> vector<8x128xf32>
      %c0_17 = arith.constant 0 : index
      %c0_18 = arith.constant 0 : index
      %21 = vector.load %arg6[%c0_17, %c0_18] : memref<1x128xf32, #tpu.memory_space<vmem>>, vector<1x128xf32>
      %22 = vector.broadcast %21 : vector<1x128xf32> to vector<8x128xf32>
      %23 = arith.addf %20, %22 : vector<8x128xf32>
      %cst_19 = arith.constant 0.000000e+00 : f32
      %24 = vector.broadcast %cst_19 : f32 to vector<8x128xf32>
      %25 = arith.maximumf %23, %24 : vector<8x128xf32>
      %26 = arith.truncf %25 : vector<8x128xf32> to vector<8x128xbf16>
      %c0_20 = arith.constant 0 : index
      %c0_21 = arith.constant 0 : index
      %27 = vector.load %arg7[%c0_20, %c0_21] : memref<128x128xbf16, #tpu.memory_space<vmem>>, vector<128x128xbf16>
      %cst_22 = arith.constant dense<0.000000e+00> : vector<8x128xf32>
      %28 = tpu.matmul %26, %27, %cst_22 {dimension_numbers = #tpu.dot_dimension_numbers<[1], [0], [0], [1], [0, 0, 1, 1], [], []>} : vector<8x128xbf16>, vector<128x128xbf16>, vector<8x128xf32> -> vector<8x128xf32>
      %c0_23 = arith.constant 0 : index
      %c0_24 = arith.constant 0 : index
      %29 = vector.load %arg8[%c0_23, %c0_24] : memref<1x128xf32, #tpu.memory_space<vmem>>, vector<1x128xf32>
      %30 = vector.broadcast %29 : vector<1x128xf32> to vector<8x128xf32>
      %31 = arith.addf %28, %30 : vector<8x128xf32>
      %c0_25 = arith.constant 0 : index
      %c0_26 = arith.constant 0 : index
      %32 = vector.load %arg9[%c0_25, %c0_26] : memref<8x128xf32, #tpu.memory_space<vmem>>, vector<8x128xf32>
      tpu.vector_store %arg9[%c0_25, %c0_26], %31 {strides = array<i32>} : memref<8x128xf32, #tpu.memory_space<vmem>>, vector<8x128xf32>,
    } else {
    }
    return
  }
  func.func @transform_0(%arg0: i32, %arg1: i32) -> (i32, i32) {
    %c0_i32 = arith.constant 0 : i32
    return %arg0, %arg1 : i32, i32
  }
  func.func @transform_1(%arg0: i32, %arg1: i32) -> (i32, i32) {
    %c0_i32 = arith.constant 0 : i32
    %c0_i32_0 = arith.constant 0 : i32
    return %arg1, %c0_i32 : i32, i32
  }
  func.func @transform_2(%arg0: i32, %arg1: i32) -> (i32, i32) {
    %c0_i32 = arith.constant 0 : i32
    %c0_i32_0 = arith.constant 0 : i32
    %c0_i32_1 = arith.constant 0 : i32
    return %c0_i32, %c0_i32_0 : i32, i32
  }
  func.func @transform_3(%arg0: i32, %arg1: i32) -> (i32, i32) {
    %c0_i32 = arith.constant 0 : i32
    %c0_i32_0 = arith.constant 0 : i32
    %c0_i32_1 = arith.constant 0 : i32
    return %c0_i32, %c0_i32_0 : i32, i32
  }
  func.func @transform_4(%arg0: i32, %arg1: i32) -> (i32, i32) {
    %c0_i32 = arith.constant 0 : i32
    %c0_i32_0 = arith.constant 0 : i32
    %c0_i32_1 = arith.constant 0 : i32
    return %c0_i32, %c0_i32_0 : i32, i32
  }
  func.func @transform_5(%arg0: i32, %arg1: i32) -> (i32, i32) {
    %c0_i32 = arith.constant 0 : i32
    %c0_i32_0 = arith.constant 0 : i32
    %c0_i32_1 = arith.constant 0 : i32
    return %c0_i32, %c0_i32_0 : i32, i32
  }
  func.func @transform_6(%arg0: i32, %arg1: i32) -> (i32, i32) {
    %c0_i32 = arith.constant 0 : i32
    %c0_i32_0 = arith.constant 0 : i32
    %c0_i32_1 = arith.constant 0 : i32
    return %c0_i32, %c0_i32_0 : i32, i32
  }
  func.func @transform_7(%arg0: i32, %arg1: i32) -> (i32, i32) {
    %c0_i32 = arith.constant 0 : i32
    %c0_i32_0 = arith.constant 0 : i32
    return %arg0, %c0_i32 : i32, i32
  }
}

</mosaic_0001>

<bundles_post_ra>
// kernel: simclr_forward.1
= control target key start
LH: loop header
LB: loop body
LE: loop exit
PB: predicated region body
PF: predicated region fallthrough
CT: control target
= control target key end

     0   :  { %s1259_s24 = smov 0   ;;  %s1261_s25 = smov 0   ;;  %s1396_s0 = inlined_call_operand.vmem [shape: bf16[8,1024], index: 0, kind: input, shape index: {}]   ;;  %s1397_s1 = inlined_call_operand.vmem [shape: bf16[1024,128], index: 1, kind: input, shape index: {}]   ;;  %s1398_s2 = inlined_call_operand.vmem [shape: f32[1,128], index: 2, kind: input, shape index: {}]   ;;  %s1399_s3 = inlined_call_operand.vmem [shape: bf16[128,128], index: 3, kind: input, shape index: {}]   ;;  %s1400_s4 = inlined_call_operand.vmem [shape: f32[1,128], index: 4, kind: input, shape index: {}]   ;;  %s1401_s5 = inlined_call_operand.vmem [shape: bf16[128,128], index: 5, kind: input, shape index: {}]   ;;  %s1402_s6 = inlined_call_operand.vmem [shape: f32[1,128], index: 6, kind: input, shape index: {}]   ;;  %s1403_s7 = inlined_call_operand.vmem [shape: f32[8,128], index: 7, kind: output, shape index: {}]  }
   0x1   :  { %s1263_s26 = smov 0  }
   0x2 LB: > { %s26_s27 = sadd.s32 1, %s1212_s25  ;;  %p916_p0 = scmp.ge.s32.totalorder %s1216_s26, 1  ;;  %s1216_s26 = sphi %s1263_s26, %s17_s26   ;;  %s1212_s25 = sphi %s1261_s25, %s1405_s25   ;;  %s1208_s24 = sphi %s1259_s24, %s1404_s24  }
   0x3   : > { %p27_p1 = scmp.ge.s32.totalorder %s26_s27, 2  ;;  %p267_p2 = scmp.lt.s32.totalorder %s1216_s26, 3 }
   0x5   : > { %s1407_s27 = smov (%p27_p1, %s26_s27), 0  ;;  %p268_p3 = pnand %p916_p0, %p267_p2 }
   0x6   : > { %s917_s28 = sshll.u32 (!%p268_p3), %s1208_s24, 2  ;;  %s919_s29 = sshll.u32 (!%p268_p3), %s1208_s24, 6 }
   0x7   : > { %271 = sbr.rel (%p268_p3) target bundleno = 495 (0x1ef), region = 48  ;;  %p310_p4 = scmp.lt.s32.totalorder (!%p268_p3), %s917_s28, 7 }
   0x8   : > { %p318_p5 = scmp.lt.s32.totalorder (!%p268_p3), %s919_s29, 127  ;;  %p921_p6 = scmp.ne.s32.totalorder (!%p268_p3), %s1208_s24, 0 }
   0xc   : > { %s1409_s28 = smov (!%p310_p4, %s917_s28), 7  ;;  %s1411_s29 = smov (!%p318_p5, %s919_s29), 127 }
   0xd   : > { %s918_s30 = sshll.u32 %s1409_s28, 2  ;;  %s920_s11 = sshll.u32 %s1411_s29, 2 }
   0xe   : > { %s1284_s10 = scalar_lea.vmem %s1396_s0, %s918_s30  ;;  %s1289_s14 = scalar_lea.vmem %s1397_s1, %s920_s11 }
   0xf   : > { %330 = sbr.rel (%p921_p6) target bundleno = 22 (0x16), region = 52 }
  0x14   : > { %v1218_v0 = vmov 0.0  }
  0x15   : > { %331 = vst [vmem:[#allocation2] sm:$0xff] %v1218_v0 }
  0x16 PF: > { %v1125_v1 = vld [vmem:[%s1289_s14 + $0x38] sm:$0xff]  ;;  %v1124_v5 = vld [vmem:[%s1289_s14 + $0x30] sm:$0xff]  ;;  %v1123_v9 = vld [vmem:[%s1289_s14 + $0x28] sm:$0xff]  ;;  %p1050_p7 = scmp.ne.s32.totalorder %s1208_s24, 1 }
  0x17   : > { %v1133_v2 = vld [vmem:[%s1289_s14 + $0x78] sm:$0xff]  ;;  %605 = vmatpush.bf16.msra.mxu0 %v1125_v1  ;;  %v1132_v6 = vld [vmem:[%s1289_s14 + $0x70] sm:$0xff]  ;;  %v1131_v10 = vld [vmem:[%s1289_s14 + $0x68] sm:$0xff] }
  0x18   : > { %v1141_v3 = vld [vmem:[%s1289_s14 + $0xb8] sm:$0xff]  ;;  %618 = vmatpush.bf16.msra.mxu1 %v1133_v2  ;;  %v1140_v7 = vld [vmem:[%s1289_s14 + $0xb0] sm:$0xff]  ;;  %v1139_v11 = vld [vmem:[%s1289_s14 + $0xa8] sm:$0xff] }
  0x19   : > { %v1149_v4 = vld [vmem:[%s1289_s14 + $0xf8] sm:$0xff]  ;;  %631 = vmatpush.bf16.msra.mxu2 %v1141_v3  ;;  %v1148_v8 = vld [vmem:[%s1289_s14 + $0xf0] sm:$0xff]  ;;  %v1147_v12 = vld [vmem:[%s1289_s14 + $0xe8] sm:$0xff] }
  0x1a   : > { %644 = vmatpush.bf16.msra.mxu3 %v1149_v4  ;;  %v1122_v13 = vld [vmem:[%s1289_s14 + $0x20] sm:$0xff]  ;;  %v1121_v17 = vld [vmem:[%s1289_s14 + $0x18] sm:$0xff]  ;;  %v1120_v21 = vld [vmem:[%s1289_s14 + $0x10] sm:$0xff] }
  0x1b   : > { %606 = vmatpush.bf16.msra.mxu0 %v1124_v5  ;;  %v1130_v14 = vld [vmem:[%s1289_s14 + $0x60] sm:$0xff]  ;;  %v1129_v18 = vld [vmem:[%s1289_s14 + $0x58] sm:$0xff]  ;;  %v1128_v22 = vld [vmem:[%s1289_s14 + $0x50] sm:$0xff] }
  0x1c   : > { %619 = vmatpush.bf16.msra.mxu1 %v1132_v6  ;;  %v1138_v15 = vld [vmem:[%s1289_s14 + $0xa0] sm:$0xff]  ;;  %v1137_v19 = vld [vmem:[%s1289_s14 + $0x98] sm:$0xff]  ;;  %v1136_v23 = vld [vmem:[%s1289_s14 + $0x90] sm:$0xff] }
  0x1d   : > { %632 = vmatpush.bf16.msra.mxu2 %v1140_v7  ;;  %v1146_v16 = vld [vmem:[%s1289_s14 + $0xe0] sm:$0xff]  ;;  %v1145_v20 = vld [vmem:[%s1289_s14 + $0xd8] sm:$0xff]  ;;  %v1144_v24 = vld [vmem:[%s1289_s14 + $0xd0] sm:$0xff] }
  0x1e   : > { %645 = vmatpush.bf16.msra.mxu3 %v1148_v8  ;;  %v1119_v25 = vld [vmem:[%s1289_s14 + $0x8] sm:$0xff]  ;;  %v333_v27 = vld [vmem:[%s1284_s10] sm:$0xff] }
  0x1f   : > { %607 = vmatpush.bf16.msra.mxu0 %v1123_v9  ;;  %v1127_v26 = vld [vmem:[%s1289_s14 + $0x48] sm:$0xff]  ;;  %v401_v31 = vunpack.c.l.b16 %v333_v27  ;;  %v402_v32 = vunpack.c.h.b16 %v333_v27  ;;  %v1118_v33 = vld [vmem:[%s1289_s14] sm:$0xff] }
  0x20   : > { %620 = vmatpush.bf16.msra.mxu1 %v1131_v10  ;;  %v1135_v28 = vld [vmem:[%s1289_s14 + $0x88] sm:$0xff]  ;;  %v1126_v34 = vld [vmem:[%s1289_s14 + $0x40] sm:$0xff] }
  0x21   : > { %633 = vmatpush.bf16.msra.mxu2 %v1139_v11  ;;  %v1143_v29 = vld [vmem:[%s1289_s14 + $0xc8] sm:$0xff]  ;;  %v1134_v37 = vld [vmem:[%s1289_s14 + $0x80] sm:$0xff]  ;;  %v405_v39 = vpack.c.b16 %v401_v31, %v401_v31  ;;  %v406_v40 = vpack.c.b16 %v402_v32, %v402_v32 }
  0x22   : > { %646 = vmatpush.bf16.msra.mxu3 %v1147_v12  ;;  %v334_v30 = vld [vmem:[%s1284_s10 + $0x8] sm:$0xff]  ;;  %v1142_v38 = vld [vmem:[%s1289_s14 + $0xc0] sm:$0xff] }
  0x23   : > { %608 = vmatpush.bf16.msra.mxu0 %v1122_v13  ;;  %v403_v35 = vunpack.c.l.b16 %v334_v30  ;;  %v404_v36 = vunpack.c.h.b16 %v334_v30  ;;  %v332_v51 = vld [vmem:[#allocation2] sm:$0xff] }
  0x24   : > { %621 = vmatpush.bf16.msra.mxu1 %v1130_v14 }
  0x25   : > { %634 = vmatpush.bf16.msra.mxu2 %v1138_v15  ;;  %v407_v41 = vpack.c.b16 %v403_v35, %v403_v35  ;;  %v408_v42 = vpack.c.b16 %v404_v36, %v404_v36 }
  0x26   : > { %647 = vmatpush.bf16.msra.mxu3 %v1146_v16 }
  0x27   : > { %609 = vmatpush.bf16.msra.mxu0 %v1121_v17 }
  0x28   : > { %622 = vmatpush.bf16.msra.mxu1 %v1129_v18 }
  0x29   : > { %635 = vmatpush.bf16.msra.mxu2 %v1137_v19 }
  0x2a   : > { %648 = vmatpush.bf16.msra.mxu3 %v1145_v20 }
  0x2b   : > { %610 = vmatpush.bf16.msra.mxu0 %v1120_v21 }
  0x2c   : > { %623 = vmatpush.bf16.msra.mxu1 %v1128_v22 }
  0x2d   : > { %636 = vmatpush.bf16.msra.mxu2 %v1136_v23 }
  0x2e   : > { %649 = vmatpush.bf16.msra.mxu3 %v1144_v24 }
  0x2f   : > { %611 = vmatpush.bf16.msra.mxu0 %v1119_v25 }
  0x30   : > { %624 = vmatpush.bf16.msra.mxu1 %v1127_v26 }
  0x31   : > { %637 = vmatpush.bf16.msra.mxu2 %v1135_v28 }
  0x32   : > { %650 = vmatpush.bf16.msra.mxu3 %v1143_v29 }
  0x33   : > { %612 = vmatpush.bf16.msra.mxu0 %v1118_v33 }
  0x34   : > { %625 = vmatpush.bf16.msra.mxu1 %v1126_v34 }
  0x35   : > { %638 = vmatpush.bf16.msra.mxu2 %v1134_v37 }
  0x36   : > { %651 = vmatpush.bf16.msra.mxu3 %v1142_v38  ;;  %613 = vmatmul.bf16.vlgmr.msra.gmra.mxu0 %v405_v39 }
  0x37   : > { %626 = vmatmul.bf16.vlgmr.msra.gmra.mxu1 %v406_v40 }
  0x38   : > { %639 = vmatmul.bf16.vlgmr.msra.gmra.mxu2 %v407_v41 }
  0x39   : > { %652 = vmatmul.bf16.vlgmr.msra.gmra.mxu3 %v408_v42 }
  0xb3   : > { %v614_v43 = vpop.f32.mrf.mxu0 }
  0xb4   : > { %v627_v44 = vpop.f32.mrf.mxu1 }
  0xb5   : > { %v628_v45 = vadd.f32 %v627_v44, %v614_v43 }
  0xbb   : > { %v640_v46 = vpop.f32.mrf.mxu2  ;;  %v616_v49 = vpop.f32.mrf.mxu0 }
  0xbc   : > { %v653_v47 = vpop.f32.mrf.mxu3  ;;  %v641_v48 = vadd.f32 %v640_v46, %v628_v45  ;;  %v629_v50 = vpop.f32.mrf.mxu1 }
  0xbe   : > { %v654_v52 = vadd.f32 %v653_v47, %v641_v48 }
  0xc0   : > { %v657_v53 = vadd.f32 %v654_v52, %v332_v51  ;;  %662 = sbr.rel (%p1050_p7) target bundleno = 495 (0x1ef), region = 56 }
  0xc2   : > { %658 = vst [vmem:[#allocation2] sm:$0xff] %v657_v53 }
  0xc3   : > { %v642_v54 = vpop.f32.mrf.mxu2 }
  0xc4   : > { %v655_v55 = vpop.f32.mrf.mxu3 }
  0xc5   : > { %v1157_v56 = vld [vmem:[%s1399_s3 + $0x38] sm:$0xff]  ;;  %v1156_v57 = vld [vmem:[%s1399_s3 + $0x30] sm:$0xff]  ;;  %v1155_v60 = vld [vmem:[%s1399_s3 + $0x28] sm:$0xff] }
  0xc6   : > { %739 = vmatpush.bf16.msra.mxu0 %v1157_v56  ;;  %v1165_v58 = vld [vmem:[%s1401_s5 + $0x38] sm:$0xff]  ;;  %v1164_v59 = vld [vmem:[%s1401_s5 + $0x30] sm:$0xff]  ;;  %v1163_v61 = vld [vmem:[%s1401_s5 + $0x28] sm:$0xff] }
  0xc7   : > { %822 = vmatpush.bf16.msra.mxu1 %v1165_v58  ;;  %v1154_v62 = vld [vmem:[%s1399_s3 + $0x20] sm:$0xff]  ;;  %v1153_v0 = vld [vmem:[%s1399_s3 + $0x18] sm:$0xff]  ;;  %v1152_v3 = vld [vmem:[%s1399_s3 + $0x10] sm:$0xff] }
  0xc8   : > { %v1162_v63 = vld [vmem:[%s1401_s5 + $0x20] sm:$0xff]  ;;  %v1161_v2 = vld [vmem:[%s1401_s5 + $0x18] sm:$0xff]  ;;  %v1160_v6 = vld [vmem:[%s1401_s5 + $0x10] sm:$0xff] }
  0xc9   : > { %v1191_v1 = vld [vmem:[%s1398_s2] ss:$0 sm:$0xff]  ;;  %v1151_v7 = vld [vmem:[%s1399_s3 + $0x8] sm:$0xff] }
  0xca   : > { %740 = vmatpush.bf16.msra.mxu0 %v1156_v57  ;;  %v663_v4 = vld [vmem:[#allocation2] sm:$0xff]  ;;  %v1159_v11 = vld [vmem:[%s1401_s5 + $0x8] sm:$0xff] }
  0xcb   : > { %823 = vmatpush.bf16.msra.mxu1 %v1164_v59  ;;  %v668_v5 = vadd.f32 %v1191_v1, %v663_v4  ;;  %v1150_v9 = vld [vmem:[%s1399_s3] sm:$0xff] }
  0xcc   : > { %v1158_v12 = vld [vmem:[%s1401_s5] sm:$0xff] }
  0xcd   : > { %v669_v8 = vmax.f32 %v668_v5, 0.0  ;;  %v1192_v13 = vld [vmem:[%s1400_s4] ss:$0 sm:$0xff] }
  0xce   : > { %741 = vmatpush.bf16.msra.mxu0 %v1155_v60  ;;  %v1193_v19 = vld [vmem:[%s1402_s6] ss:$0 sm:$0xff] }
  0xcf   : > { %824 = vmatpush.bf16.msra.mxu1 %v1163_v61  ;;  %v670_v10 = vpack.c.bf16 %v669_v8, %v669_v8 }
  0xd2   : > { %742 = vmatpush.bf16.msra.mxu0 %v1154_v62 }
  0xd3   : > { %825 = vmatpush.bf16.msra.mxu1 %v1162_v63 }
  0xd6   : > { %743 = vmatpush.bf16.msra.mxu0 %v1153_v0 }
  0xd7   : > { %826 = vmatpush.bf16.msra.mxu1 %v1161_v2 }
  0xda   : > { %744 = vmatpush.bf16.msra.mxu0 %v1152_v3 }
  0xdb   : > { %827 = vmatpush.bf16.msra.mxu1 %v1160_v6 }
  0xde   : > { %745 = vmatpush.bf16.msra.mxu0 %v1151_v7 }
  0xdf   : > { %828 = vmatpush.bf16.msra.mxu1 %v1159_v11 }
  0xe2   : > { %746 = vmatpush.bf16.msra.mxu0 %v1150_v9 }
  0xe3   : > { %829 = vmatpush.bf16.msra.mxu1 %v1158_v12 }
  0xe5   : > { %747 = vmatmul.bf16.vlgmr.msra.gmra.mxu0 %v670_v10 }
 0x162   : > { %v748_v14 = vpop.f32.mrf.mxu0 }
 0x163   : > { %v749_v15 = vadd.f32 %v1192_v13, %v748_v14 }
 0x165   : > { %v752_v16 = vmax.f32 %v749_v15, 0.0 }
 0x167   : > { %v753_v17 = vpack.c.bf16 %v752_v16, %v752_v16 }
 0x169   : > { %830 = vmatmul.bf16.vlgmr.msra.gmra.mxu1 %v753_v17 }
 0x16a   : > { %v750_v18 = vpop.f32.mrf.mxu0 }
 0x1e6   : > { %v831_v20 = vpop.f32.mrf.mxu1 }
 0x1e7   : > { %v832_v21 = vadd.f32 %v1193_v19, %v831_v20 }
 0x1e9   : > { %835 = vst [vmem:[%s1403_s7] sm:$0xff] %v832_v21 }
 0x1ee   : > { %v833_v22 = vpop.f32.mrf.mxu1 }
 0x1ef PF: > { %s17_s26 = sadd.s32 1, %s1216_s26   ;;  %s1404_s24 = smov %s1212_s25 }
 0x1f0   : > { %p14_p8 = scmp.ge.s32.totalorder %s17_s26, 4   ;;  %s1405_s25 = smov %s1407_s27 }
 0x1f2   :  { %16 = sbr.rel (!%p14_p8) target bundleno = 2 (0x2), region = 89 }

</bundles_post_ra>
